<compile_context>
chip_gen: v7x
topology: tpu7x:2x2x1
jax: 0.10.0
libtpu: 0.0.40
codegen_flags: <defaults>
</compile_context>

<pallas_src>
import functools

import jax
import jax.numpy as jnp
from jax.experimental import pallas as pl
from jax.experimental.pallas import tpu as pltpu

LN_EPS = 1e-5


def _round_up(n, m):
    return ((n + m - 1) // m) * m


def msdi_tabular_kernel(
    x_ref,        # (TILE_B, in_dim_pad)             (f32 or bf16)
    w1_ref,       # (in_dim_pad, proj_dim)           (f32 or bf16)
    vec_ref,      # (8, proj_dim) f32: rows 0..3 = b1, gamma, beta, b2
    w2_ref,       # (proj_dim, proj_dim)             (f32 or bf16)
    wout_ref,     # (2*proj_dim, out_pad) = [mem.T ; w3], zero-padded cols
    bout_ref,     # (1, out_pad)           = b3, zero-padded cols
    out_ref,      # (TILE_B, out_pad)                f32
):
    b1 = vec_ref[0:1, :]
    gamma = vec_ref[1:2, :]
    beta = vec_ref[2:3, :]
    b2 = vec_ref[3:4, :]

    # ---- proj: Linear(input_dim, proj_dim), K zero-padded to 128 ----
    z = jnp.dot(x_ref[...], w1_ref[...],
                preferred_element_type=jnp.float32) + b1

    # ---- LayerNorm over the real proj_dim (f32 statistics) ----
    mean = jnp.mean(z, axis=-1, keepdims=True)
    zc = z - mean
    var = jnp.mean(zc * zc, axis=-1, keepdims=True)
    z = zc * jax.lax.rsqrt(var + LN_EPS)
    z = z * gamma + beta

    # ---- ReLU (f32 on the VPU) ----
    z = jnp.maximum(z, 0.0)

    # ---- MLP hidden: Linear(proj_dim, proj_dim) + ReLU ----
    h = jnp.dot(z.astype(w2_ref.dtype), w2_ref[...],
                preferred_element_type=jnp.float32) + b2
    h = jnp.maximum(h, 0.0)

    # ---- fused head: [z | h] @ [mem.T ; w3] + b3  (one K=128 MXU pass) ----
    zh = jnp.concatenate([z, h], axis=-1).astype(wout_ref.dtype)
    out = jnp.dot(zh, wout_ref[...],
                  preferred_element_type=jnp.float32) + bout_ref[...]

    out_ref[...] = out.astype(out_ref.dtype)


@functools.partial(jax.jit, static_argnames=("tile_b", "use_bf16_mxu"))
def msdi_tabular_forward(x, params, *, tile_b=512, use_bf16_mxu=False):
    """x: (B, input_dim) f32.  params: dict of f32 arrays (see init_params)."""
    B, input_dim = x.shape
    proj_dim = params["w1"].shape[1]
    num_classes = params["w3"].shape[1]

    in_dim_pad = _round_up(input_dim, 128)            # 80 -> 128 (lane/K align)
    out_pad = _round_up(max(num_classes, 128), 128)   # lane-dense output slab

    # Batch tiling: big tiles for pipelining, never larger than the batch.
    tile_b = min(tile_b, _round_up(B, 8))
    b_pad = _round_up(B, tile_b)

    # Host-side packing / padding (all zero-pads are mathematically inert).
    x_p = jnp.pad(x, ((0, b_pad - B), (0, in_dim_pad - input_dim)))
    w1 = jnp.pad(params["w1"], ((0, in_dim_pad - input_dim), (0, 0)))

    # Pack the four per-feature vectors into one sublane-aligned resident block.
    vecs = jnp.concatenate(
        [params["b1"], params["gamma"], params["beta"], params["b2"]], axis=0)
    vecs = jnp.pad(vecs, ((0, 8 - vecs.shape[0]), (0, 0))).astype(jnp.float32)

    # Fused head weight: [mem.T ; w3] -> (2*proj_dim, out_pad).
    w_out = jnp.concatenate([params["mem"].T, params["w3"]], axis=0)
    w_out = jnp.pad(w_out, ((0, 0), (0, out_pad - num_classes)))
    b_out = jnp.pad(params["b3"], ((0, 0), (0, out_pad - num_classes)))
    b_out = b_out.astype(jnp.float32)

    mxu_dtype = jnp.bfloat16 if use_bf16_mxu else jnp.float32
    x_p = x_p.astype(mxu_dtype)
    w1 = w1.astype(mxu_dtype)
    w2 = params["w2"].astype(mxu_dtype)
    w_out = w_out.astype(mxu_dtype)

    grid = (b_pad // tile_b,)

    def resident(shape):  # weights/biases: same block every grid step
        return pl.BlockSpec(shape, lambda i: (0, 0))

    out = pl.pallas_call(
        msdi_tabular_kernel,
        out_shape=jax.ShapeDtypeStruct((b_pad, out_pad), jnp.float32),
        grid=grid,
        in_specs=[
            pl.BlockSpec((tile_b, in_dim_pad), lambda i: (i, 0)),   # x tile
            resident((in_dim_pad, proj_dim)),                       # w1
            resident((8, proj_dim)),                                # b1/gamma/beta/b2
            resident((proj_dim, proj_dim)),                         # w2
            resident((2 * proj_dim, out_pad)),                      # w_out
            resident((1, out_pad)),                                 # b_out
        ],
        out_specs=pl.BlockSpec((tile_b, out_pad), lambda i: (i, 0)),
        compiler_params=pltpu.CompilerParams(
            dimension_semantics=("parallel",)),
    )(x_p, w1, vecs, w2, w_out, b_out)

    return out[:B, :num_classes]


def init_params(key, input_dim=80, proj_dim=64, num_classes=2):
    ks = jax.random.split(key, 8)
    # Linear-style init (deterministic, synthetic — not a checkpoint load).
    w1 = jax.random.normal(ks[0], (input_dim, proj_dim), jnp.float32) * 0.05
    b1 = jax.random.normal(ks[1], (1, proj_dim), jnp.float32) * 0.01
    gamma = jnp.ones((1, proj_dim), jnp.float32)             # nn.LayerNorm default
    beta = jnp.zeros((1, proj_dim), jnp.float32)
    mem = jax.random.normal(ks[2], (num_classes, proj_dim), jnp.float32)
    mem = mem / jnp.linalg.norm(mem, axis=1, keepdims=True)  # F.normalize(dim=1)
    w2 = jax.random.normal(ks[3], (proj_dim, proj_dim), jnp.float32) * 0.05
    b2 = jax.random.normal(ks[4], (1, proj_dim), jnp.float32) * 0.01
    w3 = jax.random.normal(ks[5], (proj_dim, num_classes), jnp.float32) * 0.05
    b3 = jax.random.normal(ks[6], (1, num_classes), jnp.float32) * 0.01
    return {
        "w1": w1, "b1": b1, "gamma": gamma, "beta": beta,
        "mem": mem, "w2": w2, "b2": b2, "w3": w3, "b3": b3,
    }


def reference_forward(x, p):
    """Pure-JAX reference mirroring the PyTorch forward (use_mlp=True)."""
    z = x @ p["w1"] + p["b1"]
    mean = jnp.mean(z, axis=-1, keepdims=True)
    var = jnp.mean((z - mean) ** 2, axis=-1, keepdims=True)
    z = (z - mean) / jnp.sqrt(var + LN_EPS) * p["gamma"] + p["beta"]
    z = jnp.maximum(z, 0.0)
    logits = z @ p["mem"].T
    h = jnp.maximum(z @ p["w2"] + p["b2"], 0.0)
    return logits + h @ p["w3"] + p["b3"]


if __name__ == "__main__":
    key = jax.random.PRNGKey(0)
    k_x, k_p = jax.random.split(key)

    B, INPUT_DIM, PROJ_DIM, NUM_CLASSES = 8, 80, 64, 2
    x = jax.random.normal(k_x, (B, INPUT_DIM), jnp.float32)
    params = init_params(k_p, INPUT_DIM, PROJ_DIM, NUM_CLASSES)

    ref = reference_forward(x, params)

    # f32 path (tight match vs. reference).
    out = jax.block_until_ready(msdi_tabular_forward(x, params))
    assert out.shape == (B, NUM_CLASSES), out.shape
    assert jnp.allclose(out, ref, atol=1e-4, rtol=1e-4), (
        float(jnp.max(jnp.abs(out - ref))))

    # bf16-MXU fast path (v6e/v7x); f32 accumulate + f32 LN/ReLU, looser tol.
    out_bf16 = jax.block_until_ready(
        msdi_tabular_forward(x, params, use_bf16_mxu=True))
    assert out_bf16.shape == (B, NUM_CLASSES), out_bf16.shape
    assert jnp.allclose(out_bf16, ref, atol=2e-1, rtol=5e-2), (
        float(jnp.max(jnp.abs(out_bf16 - ref))))

    print("KERNEL_OK")
</pallas_src>

<mosaic_0001>
module attributes {stable_mosaic.version = 11 : i64} {
  func.func @msdi_tabular_kernel(%arg0: i32, %arg1: memref<8x128xf32, #tpu.memory_space<vmem>>, %arg2: memref<128x64xf32, #tpu.memory_space<vmem>>, %arg3: memref<8x64xf32, #tpu.memory_space<vmem>>, %arg4: memref<64x64xf32, #tpu.memory_space<vmem>>, %arg5: memref<128x128xf32, #tpu.memory_space<vmem>>, %arg6: memref<1x128xf32, #tpu.memory_space<vmem>>, %arg7: memref<8x128xf32, #tpu.memory_space<vmem>>) attributes {dimension_semantics = [#tpu.dimension_semantics<parallel>], iteration_bounds = array<i64: 1>, scalar_prefetch = 0 : i64, scratch_operands = 0 : i64, tpu.core_type = #tpu.core_type<tc>, window_params = [{transform_indices = @transform_0, window_bounds = array<i64: 8, 128>}, {pipeline_mode = #tpu.pipeline_mode<synchronous>, transform_indices = @transform_1, window_bounds = array<i64: 128, 64>}, {pipeline_mode = #tpu.pipeline_mode<synchronous>, transform_indices = @transform_2, window_bounds = array<i64: 8, 64>}, {pipeline_mode = #tpu.pipeline_mode<synchronous>, transform_indices = @transform_3, window_bounds = array<i64: 64, 64>}, {pipeline_mode = #tpu.pipeline_mode<synchronous>, transform_indices = @transform_4, window_bounds = array<i64: 128, 128>}, {pipeline_mode = #tpu.pipeline_mode<synchronous>, transform_indices = @transform_5, window_bounds = array<i64: 1, 128>}, {transform_indices = @transform_6, window_bounds = array<i64: 8, 128>}]} {
    %c0 = arith.constant 0 : index
    %c0_0 = arith.constant 0 : index
    %0 = vector.load %arg3[%c0, %c0_0] : memref<8x64xf32, #tpu.memory_space<vmem>>, vector<1x64xf32>
    %c1 = arith.constant 1 : index
    %c0_1 = arith.constant 0 : index
    %1 = vector.load %arg3[%c1, %c0_1] : memref<8x64xf32, #tpu.memory_space<vmem>>, vector<1x64xf32>
    %c2 = arith.constant 2 : index
    %c0_2 = arith.constant 0 : index
    %2 = vector.load %arg3[%c2, %c0_2] : memref<8x64xf32, #tpu.memory_space<vmem>>, vector<1x64xf32>
    %c3 = arith.constant 3 : index
    %c0_3 = arith.constant 0 : index
    %3 = vector.load %arg3[%c3, %c0_3] : memref<8x64xf32, #tpu.memory_space<vmem>>, vector<1x64xf32>
    %c0_4 = arith.constant 0 : index
    %c0_5 = arith.constant 0 : index
    %4 = vector.load %arg1[%c0_4, %c0_5] : memref<8x128xf32, #tpu.memory_space<vmem>>, vector<8x128xf32>
    %c0_6 = arith.constant 0 : index
    %c0_7 = arith.constant 0 : index
    %5 = vector.load %arg2[%c0_6, %c0_7] : memref<128x64xf32, #tpu.memory_space<vmem>>, vector<128x64xf32>
    %cst = arith.constant dense<0.000000e+00> : vector<8x64xf32>
    %6 = tpu.matmul %4, %5, %cst {dimension_numbers = #tpu.dot_dimension_numbers<[1], [0], [0], [1], [0, 0, 1, 1], [], []>} : vector<8x128xf32>, vector<128x64xf32>, vector<8x64xf32> -> vector<8x64xf32>
    %7 = vector.broadcast %0 : vector<1x64xf32> to vector<8x64xf32>
    %8 = arith.addf %6, %7 : vector<8x64xf32>
    %cst_8 = arith.constant dense<0.000000e+00> : vector<8xf32>
    %9 = vector.multi_reduction <add>, %8, %cst_8 [1] : vector<8x64xf32> to vector<8xf32>
    %10 = vector.shape_cast %9 : vector<8xf32> to vector<8x1xf32>
    %cst_9 = arith.constant 6.400000e+01 : f32
    %11 = vector.broadcast %cst_9 : f32 to vector<8x1xf32>
    %12 = arith.divf %10, %11 : vector<8x1xf32>
    %13 = vector.broadcast %12 : vector<8x1xf32> to vector<8x64xf32>
    %14 = arith.subf %8, %13 : vector<8x64xf32>
    %15 = arith.mulf %14, %14 : vector<8x64xf32>
    %cst_10 = arith.constant dense<0.000000e+00> : vector<8xf32>
    %16 = vector.multi_reduction <add>, %15, %cst_10 [1] : vector<8x64xf32> to vector<8xf32>
    %17 = vector.shape_cast %16 : vector<8xf32> to vector<8x1xf32>
    %cst_11 = arith.constant 6.400000e+01 : f32
    %18 = vector.broadcast %cst_11 : f32 to vector<8x1xf32>
    %19 = arith.divf %17, %18 : vector<8x1xf32>
    %cst_12 = arith.constant 9.99999974E-6 : f32
    %20 = vector.broadcast %cst_12 : f32 to vector<8x1xf32>
    %21 = arith.addf %19, %20 : vector<8x1xf32>
    %22 = math.rsqrt %21 : vector<8x1xf32>
    %23 = vector.broadcast %22 : vector<8x1xf32> to vector<8x64xf32>
    %24 = arith.mulf %14, %23 : vector<8x64xf32>
    %25 = vector.broadcast %1 : vector<1x64xf32> to vector<8x64xf32>
    %26 = arith.mulf %24, %25 : vector<8x64xf32>
    %27 = vector.broadcast %2 : vector<1x64xf32> to vector<8x64xf32>
    %28 = arith.addf %26, %27 : vector<8x64xf32>
    %cst_13 = arith.constant 0.000000e+00 : f32
    %29 = vector.broadcast %cst_13 : f32 to vector<8x64xf32>
    %30 = arith.maximumf %28, %29 : vector<8x64xf32>
    %c0_14 = arith.constant 0 : index
    %c0_15 = arith.constant 0 : index
    %31 = vector.load %arg4[%c0_14, %c0_15] : memref<64x64xf32, #tpu.memory_space<vmem>>, vector<64x64xf32>
    %cst_16 = arith.constant dense<0.000000e+00> : vector<8x64xf32>
    %32 = tpu.matmul %30, %31, %cst_16 {dimension_numbers = #tpu.dot_dimension_numbers<[1], [0], [0], [1], [0, 0, 1, 1], [], []>} : vector<8x64xf32>, vector<64x64xf32>, vector<8x64xf32> -> vector<8x64xf32>
    %33 = vector.broadcast %3 : vector<1x64xf32> to vector<8x64xf32>
    %34 = arith.addf %32, %33 : vector<8x64xf32>
    %cst_17 = arith.constant 0.000000e+00 : f32
    %35 = vector.broadcast %cst_17 : f32 to vector<8x64xf32>
    %36 = arith.maximumf %34, %35 : vector<8x64xf32>
    %37 = tpu.concatenate %30, %36 in 1 : vector<8x64xf32>, vector<8x64xf32> -> vector<8x128xf32>
    %c0_18 = arith.constant 0 : index
    %c0_19 = arith.constant 0 : index
    %38 = vector.load %arg5[%c0_18, %c0_19] : memref<128x128xf32, #tpu.memory_space<vmem>>, vector<128x128xf32>
    %cst_20 = arith.constant dense<0.000000e+00> : vector<8x128xf32>
    %39 = tpu.matmul %37, %38, %cst_20 {dimension_numbers = #tpu.dot_dimension_numbers<[1], [0], [0], [1], [0, 0, 1, 1], [], []>} : vector<8x128xf32>, vector<128x128xf32>, vector<8x128xf32> -> vector<8x128xf32>
    %c0_21 = arith.constant 0 : index
    %c0_22 = arith.constant 0 : index
    %40 = vector.load %arg6[%c0_21, %c0_22] : memref<1x128xf32, #tpu.memory_space<vmem>>, vector<1x128xf32>
    %41 = vector.broadcast %40 : vector<1x128xf32> to vector<8x128xf32>
    %42 = arith.addf %39, %41 : vector<8x128xf32>
    %c0_23 = arith.constant 0 : index
    %c0_24 = arith.constant 0 : index
    %43 = vector.load %arg7[%c0_23, %c0_24] : memref<8x128xf32, #tpu.memory_space<vmem>>, vector<8x128xf32>
    tpu.vector_store %arg7[%c0_23, %c0_24], %42 {strides = array<i32>} : memref<8x128xf32, #tpu.memory_space<vmem>>, vector<8x128xf32>,
    return
  }
  func.func @transform_0(%arg0: i32) -> (i32, i32) {
    %c0_i32 = arith.constant 0 : i32
    %c0_i32_0 = arith.constant 0 : i32
    return %arg0, %c0_i32 : i32, i32
  }
  func.func @transform_1(%arg0: i32) -> (i32, i32) {
    %c0_i32 = arith.constant 0 : i32
    %c0_i32_0 = arith.constant 0 : i32
    %c0_i32_1 = arith.constant 0 : i32
    return %c0_i32, %c0_i32_0 : i32, i32
  }
  func.func @transform_2(%arg0: i32) -> (i32, i32) {
    %c0_i32 = arith.constant 0 : i32
    %c0_i32_0 = arith.constant 0 : i32
    %c0_i32_1 = arith.constant 0 : i32
    return %c0_i32, %c0_i32_0 : i32, i32
  }
  func.func @transform_3(%arg0: i32) -> (i32, i32) {
    %c0_i32 = arith.constant 0 : i32
    %c0_i32_0 = arith.constant 0 : i32
    %c0_i32_1 = arith.constant 0 : i32
    return %c0_i32, %c0_i32_0 : i32, i32
  }
  func.func @transform_4(%arg0: i32) -> (i32, i32) {
    %c0_i32 = arith.constant 0 : i32
    %c0_i32_0 = arith.constant 0 : i32
    %c0_i32_1 = arith.constant 0 : i32
    return %c0_i32, %c0_i32_0 : i32, i32
  }
  func.func @transform_5(%arg0: i32) -> (i32, i32) {
    %c0_i32 = arith.constant 0 : i32
    %c0_i32_0 = arith.constant 0 : i32
    %c0_i32_1 = arith.constant 0 : i32
    return %c0_i32, %c0_i32_0 : i32, i32
  }
  func.func @transform_6(%arg0: i32) -> (i32, i32) {
    %c0_i32 = arith.constant 0 : i32
    %c0_i32_0 = arith.constant 0 : i32
    return %arg0, %c0_i32 : i32, i32
  }
}

</mosaic_0001>

<bundles_post_ra>
// kernel: msdi_tabular_forward.1
= control target key start
LH: loop header
LB: loop body
LE: loop exit
PB: predicated region body
PF: predicated region fallthrough
CT: control target
= control target key end

     0   :  { %v537_v0 = vmov 0.0|0.0   ;;  %vm538_vm0 = vmmov 0   ;;  %v539_v4 = vmov 0.0   ;;  %vm118_vm1 = vcmask 523264   ;;  %s747_s1 = inlined_call_operand.vmem [shape: f32[128,64], index: 1, kind: input, shape index: {}]   ;;  %s748_s0 = inlined_call_operand.vmem [shape: f32[8,128], index: 0, kind: input, shape index: {}]   ;;  %s749_s2 = inlined_call_operand.vmem [shape: f32[8,64], index: 2, kind: input, shape index: {}]   ;;  %s750_s3 = inlined_call_operand.vmem [shape: f32[64,64], index: 3, kind: input, shape index: {}]   ;;  %s751_s4 = inlined_call_operand.vmem [shape: f32[128,128], index: 4, kind: input, shape index: {}]   ;;  %s752_s5 = inlined_call_operand.vmem [shape: f32[1,128], index: 5, kind: input, shape index: {}]   ;;  %s753_s6 = inlined_call_operand.vmem [shape: f32[8,128], index: 6, kind: output, shape index: {}]  }
   0x1   :  { %471 = vmatprep.subr.bf16.mxu0 %v537_v0  ;;  %v28_v1 = vld [vmem:[%s747_s1] sm:$0xff]  ;;  %v29_v2 = vld [vmem:[%s747_s1 + $0x8] sm:$0xff]  ;;  %v30_v3 = vld [vmem:[%s747_s1 + $0x10] sm:$0xff]  ;;  %414 = vmatprep.mubr.msk.f32.mxu0 %vm538_vm0, %v539_v4 }
   0x2   :  { %v472_v5 = vpack.c.bf16 %v29_v2, %v28_v1  ;;  %v31_v6 = vld [vmem:[%s747_s1 + $0x18] sm:$0xff]  ;;  %495 = vmatprep.subr.bf16.mxu1 %v537_v0  ;;  %433 = vmatprep.mubr.msk.f32.mxu1 %vm538_vm0, %v539_v4  ;;  %v32_v8 = vld [vmem:[%s747_s1 + $0x20] sm:$0xff]  ;;  %v33_v9 = vld [vmem:[%s747_s1 + $0x28] sm:$0xff] }
   0x3   :  { %v475_v7 = vpack.c.bf16 %v31_v6, %v30_v3  ;;  %v478_v10 = vpack.c.bf16 %v33_v9, %v32_v8  ;;  %v34_v11 = vld [vmem:[%s747_s1 + $0x30] sm:$0xff]  ;;  %v35_v12 = vld [vmem:[%s747_s1 + $0x38] sm:$0xff]  ;;  %v36_v14 = vld [vmem:[%s747_s1 + $0x40] sm:$0xff] }
   0x4   :  { %473 = vmatpush3.bf16.msra.mxu0 %v472_v5  ;;  %v481_v13 = vpack.c.bf16 %v35_v12, %v34_v11  ;;  %v37_v15 = vld [vmem:[%s747_s1 + $0x48] sm:$0xff]  ;;  %v38_v17 = vld [vmem:[%s747_s1 + $0x50] sm:$0xff]  ;;  %v39_v18 = vld [vmem:[%s747_s1 + $0x58] sm:$0xff] }
   0x5   :  { %474 = vmatprep.subr.bf16.mxu0 %v537_v0  ;;  %v484_v16 = vpack.c.bf16 %v37_v15, %v36_v14  ;;  %v487_v19 = vpack.c.bf16 %v39_v18, %v38_v17  ;;  %v40_v20 = vld [vmem:[%s747_s1 + $0x60] sm:$0xff]  ;;  %v41_v21 = vld [vmem:[%s747_s1 + $0x68] sm:$0xff]  ;;  %v42_v23 = vld [vmem:[%s747_s1 + $0x70] sm:$0xff] }
   0x6   :  { %v490_v22 = vpack.c.bf16 %v41_v21, %v40_v20  ;;  %v43_v24 = vld [vmem:[%s747_s1 + $0x78] sm:$0xff]  ;;  %v27_v26 = vld [vmem:[%s748_s0] sm:$0xff]  ;;  %v145_v38 = vld [vmem:[%s750_s3 + $0x8] sm:$0xff]  ;;  %s540_s0 = smov 64  }
   0x7   :  { %v493_v25 = vpack.c.bf16 %v43_v24, %v42_v23  ;;  %v333_v27 = vld [vmem:[%s749_s2] ss:$0 sm:$0xff]  ;;  %v146_v40 = vld [vmem:[%s750_s3 + $0x10] sm:$0xff]  ;;  %v147_v41 = vld [vmem:[%s750_s3 + $0x18] sm:$0xff] }
   0x8   :  { %476 = vmatpush3.bf16.msra.mxu0 %v475_v7  ;;  %v144_v37 = vld [vmem:[%s750_s3] sm:$0xff]  ;;  %v499_v42 = vpack.c.bf16 %v147_v41, %v146_v40  ;;  %v149_v44 = vld [vmem:[%s750_s3 + $0x28] sm:$0xff]  ;;  %v150_v46 = vld [vmem:[%s750_s3 + $0x30] sm:$0xff] }
   0x9   :  { %477 = vmatprep.subr.bf16.mxu0 %v537_v0  ;;  %v496_v39 = vpack.c.bf16 %v145_v38, %v144_v37  ;;  %v148_v43 = vld [vmem:[%s750_s3 + $0x20] sm:$0xff]  ;;  %v151_v47 = vld [vmem:[%s750_s3 + $0x38] sm:$0xff]  ;;  %v236_v60 = vld [vmem:[%s751_s4 + $0x8] sm:$0xff] }
   0xa   :  { %v502_v45 = vpack.c.bf16 %v149_v44, %v148_v43  ;;  %v505_v48 = vpack.c.bf16 %v151_v47, %v150_v46  ;;  %v334_v53 = vld [vmem:[%s749_s2 + $0x1] ss:$0 sm:$0xff]  ;;  %v335_v55 = vld [vmem:[%s749_s2 + $0x2] ss:$0 sm:$0xff]  ;;  %v237_v61 = vld [vmem:[%s751_s4 + $0x10] sm:$0xff] }
   0xb   :  { %497 = vmatpush3.bf16.msra.mxu1 %v496_v39  ;;  %v235_v59 = vld [vmem:[%s751_s4] sm:$0xff]  ;;  %v238_v63 = vld [vmem:[%s751_s4 + $0x18] sm:$0xff]  ;;  %v240_v3 = vld [vmem:[%s751_s4 + $0x28] sm:$0xff] }
   0xc   :  { %479 = vmatpush3.bf16.msra.mxu0 %v478_v10  ;;  %498 = vmatprep.subr.bf16.mxu1 %v537_v0  ;;  %v508_v62 = vpack.c.bf16 %v236_v60, %v235_v59  ;;  %v511_v1 = vpack.c.bf16 %v238_v63, %v237_v61  ;;  %v239_v2 = vld [vmem:[%s751_s4 + $0x20] sm:$0xff]  ;;  %v241_v5 = vld [vmem:[%s751_s4 + $0x30] sm:$0xff]  ;;  %v242_v6 = vld [vmem:[%s751_s4 + $0x38] sm:$0xff] }
   0xd   :  { %480 = vmatprep.subr.bf16.mxu0 %v537_v0  ;;  %v517_v7 = vpack.c.bf16 %v242_v6, %v241_v5  ;;  %v243_v8 = vld [vmem:[%s751_s4 + $0x40] sm:$0xff]  ;;  %v244_v9 = vld [vmem:[%s751_s4 + $0x48] sm:$0xff]  ;;  %v245_v11 = vld [vmem:[%s751_s4 + $0x50] sm:$0xff] }
   0xe   :  { %v520_v10 = vpack.c.bf16 %v244_v9, %v243_v8  ;;  %v246_v12 = vld [vmem:[%s751_s4 + $0x58] sm:$0xff]  ;;  %v247_v14 = vld [vmem:[%s751_s4 + $0x60] sm:$0xff]  ;;  %v248_v15 = vld [vmem:[%s751_s4 + $0x68] sm:$0xff] }
   0xf   :  { %500 = vmatpush3.bf16.msra.mxu1 %v499_v42  ;;  %v249_v17 = vld [vmem:[%s751_s4 + $0x70] sm:$0xff]  ;;  %v250_v18 = vld [vmem:[%s751_s4 + $0x78] sm:$0xff]  ;;  %v336_v20 = vld [vmem:[%s749_s2 + $0x3] ss:$0 sm:$0xff] }
  0x10   :  { %482 = vmatpush3.bf16.msra.mxu0 %v481_v13  ;;  %501 = vmatprep.subr.bf16.mxu1 %v537_v0  ;;  %v523_v13 = vpack.c.bf16 %v246_v12, %v245_v11 }
  0x11   :  { %483 = vmatprep.subr.bf16.mxu0 %v537_v0 }
  0x13   :  { %503 = vmatpush3.bf16.msra.mxu1 %v502_v45 }
  0x14   :  { %485 = vmatpush3.bf16.msra.mxu0 %v484_v16  ;;  %504 = vmatprep.subr.bf16.mxu1 %v537_v0  ;;  %v526_v16 = vpack.c.bf16 %v248_v15, %v247_v14 }
  0x15   :  { %486 = vmatprep.subr.bf16.mxu0 %v537_v0 }
  0x17   :  { %506 = vmatpush3.bf16.msra.mxu1 %v505_v48 }
  0x18   :  { %488 = vmatpush3.bf16.msra.mxu0 %v487_v19  ;;  %507 = vmatprep.subr.bf16.mxu1 %v537_v0  ;;  %v529_v19 = vpack.c.bf16 %v250_v18, %v249_v17 }
  0x19   :  { %489 = vmatprep.subr.bf16.mxu0 %v537_v0 }
  0x1c   :  { %491 = vmatpush3.bf16.msra.mxu0 %v490_v22 }
  0x1d   :  { %492 = vmatprep.subr.bf16.mxu0 %v537_v0 }
  0x20   :  { %494 = vmatpush3.bf16.msra.mxu0 %v493_v25 }
  0x23   :  { %415 = vmatmul.mubr.f32.vlgmr.msra.gmra.mrb[0].mxu0 %v27_v26 }
  0xf6   :  { %v114_v28 = vpop.f32.mrb[0].mxu0 }
  0xf7   :  { %v115_v29 = vadd.f32 %v333_v27, %v114_v28  ;;  %v416_v30 = vpop.f32.mrb[1].mxu0  ;;  %v338_v27 = vld [vmem:[%s752_s5] ss:$0 sm:$0xff] }
  0xf9   :  { %v119_v31 = vsel %vm118_vm1, %v115_v29, 0.0 }
  0xfa   :  { %120 = vadd.xlane.f32.xlu0 %v119_v31 }
 0x187   :  { %v121_v32 = vpop.xlane.xlu0 %120 }
 0x188   :  { %v123_v33 = vmul.f32 0.015625, %v121_v32 }
 0x18a   :  { %v124_v34 = vsub.f32 %v115_v29, %v123_v33 }
 0x18c   :  { %v125_v35 = vmul.f32 %v124_v34, %v124_v34 }
 0x18e   :  { %v126_v36 = vsel %vm118_vm1, %v125_v35, 0.0 }
 0x18f   :  { %127 = vadd.xlane.f32.xlu0 %v126_v36 }
 0x21c   :  { %v128_v49 = vpop.xlane.xlu0 %127 }
 0x21d   :  { %v129_v50 = vmul.f32 0.015625, %v128_v49 }
 0x21f   :  { %v130_v51 = vadd.f32 1e-05, %v129_v50 }
 0x221   :  { %535 = vrsqrt.f32 %v130_v51 }
 0x22b   :  { %v536_v52 = vpop.eup %535 }
 0x22c   :  { %v132_v54 = vmul.f32 %v536_v52, %v124_v34 }
 0x22e   :  { %v137_v56 = vmul.f32 %v334_v53, %v132_v54 }
 0x230   :  { %v142_v57 = vadd.f32 %v335_v55, %v137_v56 }
 0x232   :  { %v143_v58 = vmax.f32 %v142_v57, 0.0 }
 0x234   :  { %434 = vmatmul.mubr.msk.f32.vlgmr.msra.gmra.mrb[0].mxu1 %vm118_vm1, %v143_v58 }
 0x235   :  { %468 = vmatprep.mubr.msk.f32.mxu1 %vm538_vm0, %v539_v4  ;;  %509 = vmatpush3.bf16.msra.mxu1 %v508_v62  ;;  %v514_v4 = vpack.c.bf16 %v240_v3, %v239_v2 }
 0x236   :  { %510 = vmatprep.subr.bf16.mxu1 %v537_v0 }
 0x239   :  { %512 = vmatpush3.bf16.msra.mxu1 %v511_v1 }
 0x23a   :  { %513 = vmatprep.subr.bf16.mxu1 %v537_v0 }
 0x23d   :  { %515 = vmatpush3.bf16.msra.mxu1 %v514_v4 }
 0x23e   :  { %516 = vmatprep.subr.bf16.mxu1 %v537_v0 }
 0x241   :  { %518 = vmatpush3.bf16.msra.mxu1 %v517_v7 }
 0x242   :  { %519 = vmatprep.subr.bf16.mxu1 %v537_v0 }
 0x245   :  { %521 = vmatpush3.bf16.msra.mxu1 %v520_v10 }
 0x246   :  { %522 = vmatprep.subr.bf16.mxu1 %v537_v0 }
 0x249   :  { %524 = vmatpush3.bf16.msra.mxu1 %v523_v13 }
 0x24a   :  { %525 = vmatprep.subr.bf16.mxu1 %v537_v0 }
 0x24d   :  { %527 = vmatpush3.bf16.msra.mxu1 %v526_v16 }
 0x24e   :  { %528 = vmatprep.subr.bf16.mxu1 %v537_v0 }
 0x251   :  { %530 = vmatpush3.bf16.msra.mxu1 %v529_v19 }
 0x307   :  { %v225_v21 = vpop.f32.mrb[0].mxu1 }
 0x308   :  { %v226_v22 = vadd.f32 %v336_v20, %v225_v21  ;;  %v435_v23 = vpop.f32.mrb[1].mxu1 }
 0x30a   :  { %v229_v24 = vmax.f32 %v226_v22, 0.0 }
 0x30c   :  { %231 = vrot.lane.b32.xlu1 %v229_v24, %s540_s0 }
 0x37e   :  { %v232_v25 = vpop.permute.xlu1 %231 }
 0x37f   :  { %v234_v26 = vsel %vm118_vm1, %v143_v58, %v232_v25 }
 0x380   :  { %469 = vmatmul.mubr.f32.vlgmr.msra.gmra.mrb[2].mxu1 %v234_v26 }
 0x453   :  { %v324_v0 = vpop.f32.mrb[2].mxu1 }
 0x454   :  { %v325_v28 = vadd.f32 %v338_v27, %v324_v0  ;;  %v470_v29 = vpop.f32.mrb[3].mxu1 }
 0x456   :  { %328 = vst [vmem:[%s753_s6] sm:$0xff] %v325_v28 }

</bundles_post_ra>
